<compile_context>
chip_gen: v6e
topology: v6e:2x2x1
jax: 0.10.0
libtpu: 0.0.40
codegen_flags: <defaults>
</compile_context>

<pallas_src>
import functools

import jax
import jax.numpy as jnp
from jax.experimental import pallas as pl
from jax.experimental.pallas import tpu as pltpu

INPUT_SIZE = 4
HIDDEN_SIZE = 22
OUTPUT_SIZE = 1

# constants from the PyTorch forward:
#   out = (1.8691 - 0.06231)/2 * sin(out) - (1.8691 + 0.06231)/2
SIN_SCALE = (1.8691 - 0.06231) / 2.0
SIN_SHIFT = (1.8691 + 0.06231) / 2.0

LANE = 128
DIN_B = INPUT_SIZE + 1   # 4 feature rows + 1 constant-one row (fc1 bias folded)
H_P = 24                 # round_up(HIDDEN_SIZE, 8)
DOUT_P = 8               # padded rows for w3/b3 (output array itself stays 1 row)
TN_CAP = 16384           # max lanes (batch elements) per grid step


def _round_up(x, m):
    return ((x + m - 1) // m) * m


def _choose_tile(n):
    """Bucket N to a power-of-two multiple of 128 lanes (bounds recompiles),
    pick a big tile to amortize per-step overhead, and guarantee >=2 grid
    steps for large batches so v7x's second TensorCore is used."""
    n_pad = _round_up(max(n, 1), LANE)
    n_p = LANE * int(pl.next_power_of_2(n_pad // LANE))
    tn = min(TN_CAP, n_p)
    if n_p // tn < 2 and n_p >= 8 * LANE:   # >=1024 lanes: split across 2 steps
        tn = n_p // 2
    return n_p, tn


def _pinn_kernel(x_ref, w1_ref, w2_ref, b2_ref, w3_ref, b3_ref, o_ref):
    """One batch tile, feature-major (features on sublanes, batch on lanes).

    x_ref : (DIN_B, TN)   rows 0..3 = features, row 4 = 1.0 (bias row)
    w1_ref: (H_P, DIN_B)  last column holds b1
    w2_ref: (H_P, H_P)    b2_ref: (H_P, 1)
    w3_ref: (DOUT_P, H_P) b3_ref: (DOUT_P, 1)
    o_ref : (OUTPUT_SIZE, TN)
    """
    x = x_ref[...]

    # fc1 + ReLU (bias folded into the matmul via the ones row of x)
    h1 = jnp.maximum(
        jnp.dot(w1_ref[...], x, preferred_element_type=jnp.float32), 0.0)

    # fc2 + ReLU
    h2 = jnp.maximum(
        jnp.dot(w2_ref[...], h1, preferred_element_type=jnp.float32)
        + b2_ref[...], 0.0)

    # fc3
    h3 = jnp.dot(w3_ref[...], h2, preferred_element_type=jnp.float32) + b3_ref[...]

    # Only the live output row; lane axis (batch) is dense -> unmasked store.
    o_ref[...] = SIN_SCALE * jnp.sin(h3[0:OUTPUT_SIZE, :]) - SIN_SHIFT


def prepare_params(params):
    """Pad PyTorch-layout params once ((out,in) weights, (out,) biases).

    b1 is folded into the last column of w1 (x carries a constant-1 row).
    Call once after init / parameter update; reused by every forward call."""
    f32 = jnp.float32
    w1 = jnp.zeros((H_P, DIN_B), f32)
    w1 = w1.at[:HIDDEN_SIZE, :INPUT_SIZE].set(params["w1"].astype(f32))
    w1 = w1.at[:HIDDEN_SIZE, INPUT_SIZE].set(params["b1"].astype(f32))
    w2 = jnp.zeros((H_P, H_P), f32).at[:HIDDEN_SIZE, :HIDDEN_SIZE].set(
        params["w2"].astype(f32))
    b2 = jnp.zeros((H_P, 1), f32).at[:HIDDEN_SIZE, 0].set(params["b2"].astype(f32))
    w3 = jnp.zeros((DOUT_P, H_P), f32).at[:OUTPUT_SIZE, :HIDDEN_SIZE].set(
        params["w3"].astype(f32))
    b3 = jnp.zeros((DOUT_P, 1), f32).at[:OUTPUT_SIZE, 0].set(params["b3"].astype(f32))
    return {"w1": w1, "w2": w2, "b2": b2, "w3": w3, "b3": b3}


@functools.partial(jax.jit, static_argnames=("tn",))
def _pinn_padded(x_fm, p, tn):
    """x_fm: (DIN_B, n_p) feature-major, lane-padded; returns (OUTPUT_SIZE, n_p)."""
    _, n_p = x_fm.shape
    const = lambda shape: pl.BlockSpec(shape, lambda i: (0, 0))  # VMEM-resident

    flops = 2 * n_p * (H_P * DIN_B + H_P * H_P + DOUT_P * H_P)
    bytes_accessed = 4 * (
        n_p * (DIN_B + OUTPUT_SIZE)
        + H_P * DIN_B + H_P * H_P + H_P + DOUT_P * H_P + DOUT_P)

    return pl.pallas_call(
        _pinn_kernel,
        out_shape=jax.ShapeDtypeStruct((OUTPUT_SIZE, n_p), jnp.float32),
        grid=(n_p // tn,),
        in_specs=[
            pl.BlockSpec((DIN_B, tn), lambda i: (0, i)),  # x tile, pipelined
            const((H_P, DIN_B)),
            const((H_P, H_P)),
            const((H_P, 1)),
            const((DOUT_P, H_P)),
            const((DOUT_P, 1)),
        ],
        out_specs=pl.BlockSpec((OUTPUT_SIZE, tn), lambda i: (0, i)),
        compiler_params=pltpu.CompilerParams(
            dimension_semantics=("parallel",),
        ),
        cost_estimate=pl.CostEstimate(
            flops=flops, transcendentals=n_p, bytes_accessed=bytes_accessed),
    )(x_fm, p["w1"], p["w2"], p["b2"], p["w3"], p["b3"])


def pinn_forward(x, padded_params):
    """x: (N, INPUT_SIZE) float32.  padded_params: output of prepare_params."""
    n, d_in = x.shape
    assert d_in == INPUT_SIZE
    n_p, tn = _choose_tile(n)

    # Single fused pad: feature-major (4, N) -> (DIN_B, n_p). The appended row
    # (and padded lanes, which are sliced off below) is 1.0 so the bias column
    # folded into w1 applies.  A producer that already keeps x feature-major
    # (INPUT_SIZE, N) can feed this directly and skip the transpose.
    x_fm = jnp.pad(x.astype(jnp.float32).T, ((0, 1), (0, n_p - n)),
                   constant_values=1.0)

    out_p = _pinn_padded(x_fm, padded_params, tn)   # jit keyed on bucketed shape
    return out_p[:, :n].T                           # (N, OUTPUT_SIZE)


def init_params(key):
    """Deterministic init mimicking nn.Linear's U(-1/sqrt(fan_in), 1/sqrt(fan_in)).
    Weights in PyTorch layout: (out_features, in_features)."""
    ks = jax.random.split(key, 6)

    def linear(kw, kb, fan_in, fan_out):
        bound = 1.0 / jnp.sqrt(jnp.float32(fan_in))
        w = jax.random.uniform(kw, (fan_out, fan_in), jnp.float32, -bound, bound)
        b = jax.random.uniform(kb, (fan_out,), jnp.float32, -bound, bound)
        return w, b

    w1, b1 = linear(ks[0], ks[1], INPUT_SIZE, HIDDEN_SIZE)
    w2, b2 = linear(ks[2], ks[3], HIDDEN_SIZE, HIDDEN_SIZE)
    w3, b3 = linear(ks[4], ks[5], HIDDEN_SIZE, OUTPUT_SIZE)
    return {"w1": w1, "b1": b1, "w2": w2, "b2": b2, "w3": w3, "b3": b3}


def pinn_forward_ref(x, params):
    """Pure-JAX reference (PyTorch-layout weights) for correctness check."""
    h1 = jnp.maximum(x @ params["w1"].T + params["b1"], 0.0)
    h2 = jnp.maximum(h1 @ params["w2"].T + params["b2"], 0.0)
    h3 = h2 @ params["w3"].T + params["b3"]
    return SIN_SCALE * jnp.sin(h3) - SIN_SHIFT


# TODO(synk): PINN.physics() depends on external REFPROP property-library calls
# (RP.REFPROPdll) with data-dependent scalar branching — no Pallas equivalent.

if __name__ == "__main__":
    key = jax.random.PRNGKey(0)
    k_param, k_x = jax.random.split(key)

    params = init_params(k_param)
    padded = prepare_params(params)          # one-time pad, reused every call

    # small batch + a non-multiple-of-128 batch (exercises lane padding/slice)
    for batch in (8, 300):
        kx = jax.random.fold_in(k_x, batch)
        x = jax.random.uniform(kx, (batch, INPUT_SIZE), jnp.float32)

        out = jax.block_until_ready(pinn_forward(x, padded))
        ref = pinn_forward_ref(x, params)

        assert out.shape == (batch, OUTPUT_SIZE)
        assert jnp.allclose(out, ref, atol=1e-5, rtol=1e-4), \
            f"mismatch vs reference at batch={batch}"

    print("KERNEL_OK")
</pallas_src>

<mosaic_0001>
module attributes {stable_mosaic.version = 11 : i64} {
  func.func @_pinn_kernel(%arg0: i32, %arg1: memref<5x128xf32, #tpu.memory_space<vmem>>, %arg2: memref<24x5xf32, #tpu.memory_space<vmem>>, %arg3: memref<24x24xf32, #tpu.memory_space<vmem>>, %arg4: memref<24x1xf32, #tpu.memory_space<vmem>>, %arg5: memref<8x24xf32, #tpu.memory_space<vmem>>, %arg6: memref<8x1xf32, #tpu.memory_space<vmem>>, %arg7: memref<1x128xf32, #tpu.memory_space<vmem>>) attributes {dimension_semantics = [#tpu.dimension_semantics<parallel>], iteration_bounds = array<i64: 1>, scalar_prefetch = 0 : i64, scratch_operands = 0 : i64, tpu.core_type = #tpu.core_type<tc>, window_params = [{transform_indices = @transform_0, window_bounds = array<i64: 5, 128>}, {pipeline_mode = #tpu.pipeline_mode<synchronous>, transform_indices = @transform_1, window_bounds = array<i64: 24, 5>}, {pipeline_mode = #tpu.pipeline_mode<synchronous>, transform_indices = @transform_2, window_bounds = array<i64: 24, 24>}, {pipeline_mode = #tpu.pipeline_mode<synchronous>, transform_indices = @transform_3, window_bounds = array<i64: 24, 1>}, {pipeline_mode = #tpu.pipeline_mode<synchronous>, transform_indices = @transform_4, window_bounds = array<i64: 8, 24>}, {pipeline_mode = #tpu.pipeline_mode<synchronous>, transform_indices = @transform_5, window_bounds = array<i64: 8, 1>}, {transform_indices = @transform_6, window_bounds = array<i64: 1, 128>}]} {
    %c0 = arith.constant 0 : index
    %c0_0 = arith.constant 0 : index
    %0 = vector.load %arg1[%c0, %c0_0] : memref<5x128xf32, #tpu.memory_space<vmem>>, vector<5x128xf32>
    %c0_1 = arith.constant 0 : index
    %c0_2 = arith.constant 0 : index
    %1 = vector.load %arg2[%c0_1, %c0_2] : memref<24x5xf32, #tpu.memory_space<vmem>>, vector<24x5xf32>
    %cst = arith.constant dense<0.000000e+00> : vector<24x128xf32>
    %2 = tpu.matmul %1, %0, %cst {dimension_numbers = #tpu.dot_dimension_numbers<[1], [0], [0], [1], [0, 0, 1, 1], [], []>} : vector<24x5xf32>, vector<5x128xf32>, vector<24x128xf32> -> vector<24x128xf32>
    %cst_3 = arith.constant 0.000000e+00 : f32
    %3 = vector.broadcast %cst_3 : f32 to vector<24x128xf32>
    %4 = arith.maximumf %2, %3 : vector<24x128xf32>
    %c0_4 = arith.constant 0 : index
    %c0_5 = arith.constant 0 : index
    %5 = vector.load %arg3[%c0_4, %c0_5] : memref<24x24xf32, #tpu.memory_space<vmem>>, vector<24x24xf32>
    %cst_6 = arith.constant dense<0.000000e+00> : vector<24x128xf32>
    %6 = tpu.matmul %5, %4, %cst_6 {dimension_numbers = #tpu.dot_dimension_numbers<[1], [0], [0], [1], [0, 0, 1, 1], [], []>} : vector<24x24xf32>, vector<24x128xf32>, vector<24x128xf32> -> vector<24x128xf32>
    %c0_7 = arith.constant 0 : index
    %c0_8 = arith.constant 0 : index
    %7 = vector.load %arg4[%c0_7, %c0_8] : memref<24x1xf32, #tpu.memory_space<vmem>>, vector<24x1xf32>
    %8 = vector.broadcast %7 : vector<24x1xf32> to vector<24x128xf32>
    %9 = arith.addf %6, %8 : vector<24x128xf32>
    %cst_9 = arith.constant 0.000000e+00 : f32
    %10 = vector.broadcast %cst_9 : f32 to vector<24x128xf32>
    %11 = arith.maximumf %9, %10 : vector<24x128xf32>
    %c0_10 = arith.constant 0 : index
    %c0_11 = arith.constant 0 : index
    %12 = vector.load %arg5[%c0_10, %c0_11] : memref<8x24xf32, #tpu.memory_space<vmem>>, vector<8x24xf32>
    %cst_12 = arith.constant dense<0.000000e+00> : vector<8x128xf32>
    %13 = tpu.matmul %12, %11, %cst_12 {dimension_numbers = #tpu.dot_dimension_numbers<[1], [0], [0], [1], [0, 0, 1, 1], [], []>} : vector<8x24xf32>, vector<24x128xf32>, vector<8x128xf32> -> vector<8x128xf32>
    %c0_13 = arith.constant 0 : index
    %c0_14 = arith.constant 0 : index
    %14 = vector.load %arg6[%c0_13, %c0_14] : memref<8x1xf32, #tpu.memory_space<vmem>>, vector<8x1xf32>
    %15 = vector.broadcast %14 : vector<8x1xf32> to vector<8x128xf32>
    %16 = arith.addf %13, %15 : vector<8x128xf32>
    %17 = vector.extract_strided_slice %16 {offsets = [0, 0], sizes = [1, 128], strides = [1, 1]} : vector<8x128xf32> to vector<1x128xf32>
    %18 = math.sin %17 : vector<1x128xf32>
    %cst_15 = arith.constant 0.903394997 : f32
    %19 = vector.broadcast %cst_15 : f32 to vector<1x128xf32>
    %20 = arith.mulf %19, %18 : vector<1x128xf32>
    %cst_16 = arith.constant 0.965704977 : f32
    %21 = vector.broadcast %cst_16 : f32 to vector<1x128xf32>
    %22 = arith.subf %20, %21 : vector<1x128xf32>
    %c0_17 = arith.constant 0 : index
    %c0_18 = arith.constant 0 : index
    %23 = vector.load %arg7[%c0_17, %c0_18] : memref<1x128xf32, #tpu.memory_space<vmem>>, vector<1x128xf32>
    tpu.vector_store %arg7[%c0_17, %c0_18], %22 {strides = array<i32>} : memref<1x128xf32, #tpu.memory_space<vmem>>, vector<1x128xf32>,
    return
  }
  func.func @transform_0(%arg0: i32) -> (i32, i32) {
    %c0_i32 = arith.constant 0 : i32
    %c0_i32_0 = arith.constant 0 : i32
    return %c0_i32, %arg0 : i32, i32
  }
  func.func @transform_1(%arg0: i32) -> (i32, i32) {
    %c0_i32 = arith.constant 0 : i32
    %c0_i32_0 = arith.constant 0 : i32
    %c0_i32_1 = arith.constant 0 : i32
    return %c0_i32, %c0_i32_0 : i32, i32
  }
  func.func @transform_2(%arg0: i32) -> (i32, i32) {
    %c0_i32 = arith.constant 0 : i32
    %c0_i32_0 = arith.constant 0 : i32
    %c0_i32_1 = arith.constant 0 : i32
    return %c0_i32, %c0_i32_0 : i32, i32
  }
  func.func @transform_3(%arg0: i32) -> (i32, i32) {
    %c0_i32 = arith.constant 0 : i32
    %c0_i32_0 = arith.constant 0 : i32
    %c0_i32_1 = arith.constant 0 : i32
    return %c0_i32, %c0_i32_0 : i32, i32
  }
  func.func @transform_4(%arg0: i32) -> (i32, i32) {
    %c0_i32 = arith.constant 0 : i32
    %c0_i32_0 = arith.constant 0 : i32
    %c0_i32_1 = arith.constant 0 : i32
    return %c0_i32, %c0_i32_0 : i32, i32
  }
  func.func @transform_5(%arg0: i32) -> (i32, i32) {
    %c0_i32 = arith.constant 0 : i32
    %c0_i32_0 = arith.constant 0 : i32
    %c0_i32_1 = arith.constant 0 : i32
    return %c0_i32, %c0_i32_0 : i32, i32
  }
  func.func @transform_6(%arg0: i32) -> (i32, i32) {
    %c0_i32 = arith.constant 0 : i32
    %c0_i32_0 = arith.constant 0 : i32
    return %c0_i32, %arg0 : i32, i32
  }
}

</mosaic_0001>

<bundles_post_ra>
// kernel: _pinn_padded.1
= control target key start
LH: loop header
LB: loop body
LE: loop exit
PB: predicated region body
PF: predicated region fallthrough
CT: control target
= control target key end

     0   :  { %vm38_vm0 = vcmask 1044480   ;;  %v544_v2 = vmov 0.0   ;;  %vm545_vm1 = vmmov 0   ;;  %vm28_vm2 = vcmask 39936   ;;  %s674_s0 = inlined_call_operand.vmem [shape: f32[5,128], index: 0, kind: input, shape index: {}]   ;;  %s675_s1 = inlined_call_operand.vmem [shape: f32[24,5], index: 1, kind: input, shape index: {}]   ;;  %s676_s2 = inlined_call_operand.vmem [shape: f32[24,24], index: 2, kind: input, shape index: {}]   ;;  %s677_s3 = inlined_call_operand.vmem [shape: f32[24,1], index: 3, kind: input, shape index: {}]   ;;  %s678_s4 = inlined_call_operand.vmem [shape: f32[8,24], index: 4, kind: input, shape index: {}]   ;;  %s679_s5 = inlined_call_operand.vmem [shape: f32[8,1], index: 5, kind: input, shape index: {}]   ;;  %s680_s6 = inlined_call_operand.hbm [shape: f32[1,128], index: 6, kind: output, shape index: {}]  }
   0x1   :  { %v24_v0 = vld [vmem:[%s674_s0] sm:$0x1f]  ;;  %467 = vmatprep.subr.mxu0 %v544_v2  ;;  %469 = vmatprep.mubr.msk.f32.mxu0 %vm545_vm1, %v544_v2 }
   0x2   :  { %v25_v1 = vld [vmem:[%s675_s1] sm:$0xff] }
   0x3   :  { %11 = vsyncpa [#allocation3], 0  ;;  %468 = vmatpush3.msk.msra.mxu0 %vm38_vm0, %v24_v0  ;;  %478 = vmatprep.subr.mxu1 %v544_v2  ;;  %v26_v3 = vld [vmem:[%s675_s1 + $0x8] sm:$0xff]  ;;  %v27_v4 = vld [vmem:[%s675_s1 + $0x10] sm:$0xff]  ;;  %v546_v7 = vmov 0   ;;  %vm146_vm3 = vcmask 195584  }
   0x4   :  { %470 = vmatmul.mubr.msk.f32.vlgmr.msra.gmra.mxu0 %vm28_vm2, %v25_v1  ;;  %484 = vmatprep.mubr.msk.f32.mxu1 %vm545_vm1, %v544_v2  ;;  %v130_v5 = vld [vmem:[%s677_s3 + $0x10] sm:$0xff]  ;;  %v128_v6 = vld [vmem:[%s677_s3] sm:$0xff]  ;;  %v129_v8 = vld [vmem:[%s677_s3 + $0x8] sm:$0xff]  ;;  %v547_v52 = vmov 683565275  }
   0x5   :  { %472 = vmatprep.mubr.msk.f32.mxu0 %vm545_vm1, %v544_v2  ;;  %493 = vmatprep.subr.mxu0 %v544_v2  ;;  %v240_v9 = vld [vmem:[%s679_s5] sm:$0xff]  ;;  %v126_v20 = vld [vmem:[%s676_s2 + $0x8] sm:$0xff]  ;;  %v127_v21 = vld [vmem:[%s676_s2 + $0x10] sm:$0xff]  ;;  %v548_v54 = vmov 2475754826  }
   0x6   :  { %517 = vset.pattern.permute.xlu1 %v546_v7  ;;  %516 = vset.pattern.permute.xlu0 %v546_v7  ;;  %v125_v19 = vld [vmem:[%s676_s2] sm:$0xff]  ;;  %v549_v57 = vmov 2131351028   ;;  %v550_v60 = vmov 2102212464  }
   0x7   :  { %143 = vperm.xlu0 %516, %v130_v5   ;;  %133 = vperm.xlu1 %517, %v128_v6   ;;  %v239_v37 = vld [vmem:[%s678_s4] sm:$0xff]  ;;  %v551_v63 = vmov 920167782   ;;  %s553_s4 = smov [#allocation2]  }
   0x8   :  { %473 = vmatmul.mubr.msk.f32.gmra.mxu0 %vm28_vm2, %v26_v3  ;;  %s432_s16 = sshll.u32 %s553_s4, 4  ;;  %s433_s16 = int_to_ptr.vmem [resolvable:$true] %s432_s16 }
   0x9   :  { %475 = vmatprep.mubr.msk.f32.mxu0 %vm545_vm1, %v544_v2  ;;  %s522_s17 = scalar_lea.vmem %s433_s16, 16  ;;  %s526_s18 = scalar_lea.vmem %s433_s16, 32 }
   0xa   :  { %p523_p0 = scmp.ne.s32.totalorder %s433_s16, %s522_s17  ;;  %p527_p1 = scmp.lt.s32.totalorder %s433_s16, %s433_s16 }
   0xb   :  { %138 = vperm.xlu0 %516, %v129_v8   ;;  %243 = vperm.xlu1 %517, %v240_v9   ;;  %p528_p2 = scmp.lt.s32.totalorder %s526_s18, %s522_s17 }
   0xc   :  { %476 = vmatmul.mubr.msk.f32.gmra.mxu0 %vm28_vm2, %v27_v4 }
   0xd   :  { %499 = vmatprep.mubr.msk.f32.mxu0 %vm545_vm1, %v544_v2  ;;  %p529_p3 = por %p528_p2, %p527_p1 }
   0xf   :  { %p530_p4 = pnand %p529_p3, %p523_p0 }
  0x82   :  { %v144_v22 = vpop.permute.xlu0 %143  ;;  %v134_v28 = vpop.permute.xlu1 %133 }
  0x86   :  { %v139_v26 = vpop.permute.xlu0 %138  ;;  %v244_v38 = vpop.permute.xlu1 %243 }
  0xc4   :  { %v108_v10 = vpop.f32.mrf.mxu0 }
  0xc5   :  { %v122_v18 = vmax.f32 %v108_v10, 0.0 }
  0xc6   :  { %v471_v11 = vpop.f32.mrf.mxu0 }
  0xc8   :  { %v113_v12 = vpop.f32.mrf.mxu0 }
  0xc9   :  { %v123_v17 = vmax.f32 %v113_v12, 0.0 }
  0xca   :  { %v474_v13 = vpop.f32.mrf.mxu0 }
  0xcc   :  { %v118_v14 = vpop.f32.mrf.mxu0 }
  0xcd   :  { %v124_v15 = vmax.f32 %v118_v14, 0.0 }
  0xce   :  { %v477_v16 = vpop.f32.mrf.mxu0 }
  0xcf   :  { %479 = vmatpush3.msra.mxu1 %v124_v15 }
  0xd0   :  { %480 = vmatprep.subr.mxu1 %v544_v2 }
  0xd1   :  { %481 = vmatpush3.msra.mxu1 %v123_v17 }
  0xd2   :  { %482 = vmatprep.subr.mxu1 %v544_v2 }
  0xd3   :  { %483 = vmatpush3.msra.mxu1 %v122_v18 }
  0xd4   :  { %485 = vmatmul.mubr.msk.f32.vlgmr.msra.gmra.mxu1 %vm146_vm3, %v125_v19 }
  0xd5   :  { %487 = vmatprep.mubr.msk.f32.mxu1 %vm545_vm1, %v544_v2 }
  0xd8   :  { %488 = vmatmul.mubr.msk.f32.gmra.mxu1 %vm146_vm3, %v126_v20 }
  0xd9   :  { %490 = vmatprep.mubr.msk.f32.mxu1 %vm545_vm1, %v544_v2 }
  0xdc   :  { %491 = vmatmul.mubr.msk.f32.gmra.mxu1 %vm146_vm3, %v127_v21 }
 0x194   :  { %v222_v23 = vpop.f32.mrf.mxu1 }
 0x195   :  { %v223_v33 = vadd.f32 %v222_v23, %v134_v28 }
 0x196   :  { %v486_v24 = vpop.f32.mrf.mxu1 }
 0x197   :  { %v236_v36 = vmax.f32 %v223_v33, 0.0 }
 0x198   :  { %v227_v25 = vpop.f32.mrf.mxu1 }
 0x199   :  { %v228_v30 = vadd.f32 %v227_v25, %v139_v26 }
 0x19a   :  { %v489_v27 = vpop.f32.mrf.mxu1 }
 0x19b   :  { %v237_v35 = vmax.f32 %v228_v30, 0.0 }
 0x19c   :  { %v232_v29 = vpop.f32.mrf.mxu1 }
 0x19d   :  { %v233_v31 = vadd.f32 %v232_v29, %v144_v22 }
 0x19e   :  { %v492_v32 = vpop.f32.mrf.mxu1 }
 0x19f   :  { %v238_v34 = vmax.f32 %v233_v31, 0.0 }
 0x1a1   :  { %494 = vmatpush3.msra.mxu0 %v238_v34 }
 0x1a2   :  { %495 = vmatprep.subr.mxu0 %v544_v2 }
 0x1a3   :  { %496 = vmatpush3.msra.mxu0 %v237_v35 }
 0x1a4   :  { %497 = vmatprep.subr.mxu0 %v544_v2  ;;  %v552_v2 = vmov 1326507024  }
 0x1a5   :  { %498 = vmatpush3.msra.mxu0 %v236_v36 }
 0x1a6   :  { %500 = vmatmul.mubr.msk.f32.vlgmr.msra.gmra.mxu0 %vm146_vm3, %v239_v37 }
 0x266   :  { %v315_v39 = vpop.f32.mrf.mxu0 }
 0x267   :  { %v650_v40 = vadd.f32 %v315_v39, %v244_v38 }
 0x268   :  { %v501_v41 = vpop.f32.mrf.mxu0 }
 0x269   :  { %v322_v42 = vand.u32 2139095040, %v650_v40  ;;  %v319_v46 = vand.u32 2147483647, %v650_v40  ;;  %vm321_vm11 = vcmp.lt.s32.totalorder %v650_v40, 0  ;;  %vm411_vm0 = vweird.f32 %v650_v40 }
 0x26b   :  { %v323_v43 = vshrl.u32 %v322_v42, 23  ;;  %v326_v49 = vand.u32 8388607, %v319_v46  ;;  %vm320_vm12 = vcmp.le.f32.partialorder %v319_v46, 0.7853982 }
 0x26d   :  { %v448_v44 = vadd.s32 4294967169, %v323_v43  ;;  %v327_v4 = vor.u32 8388608, %v326_v49 }
 0x26f   :  { %v329_v45 = vadd.s32 1, %v448_v44  ;;  %v367_v18 = vshll.u32 %v327_v4, 8 }
 0x271   :  { %vm330_vm4 = vcmp.gt.s32.totalorder %v329_v45, 0 }
 0x272   :  { %v331_v47 = vsel %vm330_vm4, %v329_v45, 0 }
 0x273   :  { %v333_v48 = vand.u32 31, %v331_v47  ;;  %v332_v51 = vshrl.u32 %v331_v47, 5 }
 0x275   :  { %v334_v50 = vsub.s32 32, %v333_v48  ;;  %v336_v53 = vshll.u32 %v547_v52, %v333_v48  ;;  %v339_v55 = vshll.u32 %v548_v54, %v333_v48  ;;  %v342_v59 = vshll.u32 %v549_v57, %v333_v48 }
 0x276   :  { %v345_v62 = vshll.u32 %v550_v60, %v333_v48  ;;  %v348_v1 = vshll.u32 %v551_v63, %v333_v48  ;;  %vm351_vm5 = vcmp.lt.s32.totalorder %v332_v51, 1  ;;  %vm354_vm6 = vcmp.lt.s32.totalorder %v332_v51, 4 }
 0x277   :  { %v337_v56 = vshrl.u32 %v548_v54, %v334_v50  ;;  %v340_v58 = vshrl.u32 %v549_v57, %v334_v50  ;;  %v343_v61 = vshrl.u32 %v550_v60, %v334_v50  ;;  %v346_v0 = vshrl.u32 %v551_v63, %v334_v50 }
 0x278   :  { %v349_v3 = vshrl.u32 %v552_v2, %v334_v50  ;;  %v335_v13 = vshrl.u32 %v547_v52, %v334_v50  ;;  %vm353_vm7 = vcmp.lt.s32.totalorder %v332_v51, 3  ;;  %vm352_vm8 = vcmp.lt.s32.totalorder %v332_v51, 2 }
 0x279   :  { %v338_v5 = vor.u32 %v337_v56, %v336_v53  ;;  %v341_v6 = vor.u32 %v340_v58, %v339_v55  ;;  %v344_v7 = vor.u32 %v343_v61, %v342_v59  ;;  %v347_v8 = vor.u32 %v346_v0, %v345_v62 }
 0x27a   :  { %v350_v9 = vor.u32 %v349_v3, %v348_v1 }
 0x27b   :  { %v356_v10 = vsel %vm354_vm6, %v344_v7, 2102212464  ;;  %v359_v11 = vsel %vm351_vm5, %v338_v5, %v341_v6  ;;  %v363_v12 = vsel %vm351_vm5, %v341_v6, %v344_v7  ;;  %v360_v14 = vsel %vm354_vm6, %v347_v8, 920167782 }
 0x27c   :  { %v364_v15 = vsel %vm354_vm6, %v350_v9, 1326507024  ;;  %v361_v16 = vsel %vm353_vm7, %v344_v7, %v360_v14  ;;  %v355_v19 = vsel %vm351_vm5, %v335_v13, %v338_v5  ;;  %v357_v20 = vsel %vm353_vm7, %v341_v6, %v356_v10 }
 0x27d   :  { %v365_v17 = vsel %vm353_vm7, %v347_v8, %v364_v15  ;;  %v362_v21 = vsel %vm352_vm8, %v359_v11, %v361_v16  ;;  %v358_v27 = vsel %vm352_vm8, %v355_v19, %v357_v20 }
 0x27e   :  { %v366_v22 = vsel %vm352_vm8, %v363_v12, %v365_v17  ;;  %v659_v25 = vmul.u32.u64.low %v367_v18, %v362_v21  ;;  %v660_v26 = vmul.u32.u64.high %v367_v18, %v362_v21, %v659_v25  ;;  %v374_v29 = vmul.u32 %v367_v18, %v358_v27 }
 0x27f   :  { %v656_v23 = vmul.u32.u64.low %v367_v18, %v366_v22  ;;  %v657_v24 = vmul.u32.u64.high %v367_v18, %v366_v22, %v656_v23 }
 0x280   :  { %v377_v28 = vadd.s32 1, %v660_v26 }
 0x281   :  { %vm376_vm9 = vc.u32 %v657_v24, %v659_v25  ;;  %v375_v42 = vadd.s32 %v659_v25, %v657_v24 }
 0x282   :  { %v378_v30 = vsel %vm376_vm9, %v377_v28, %v660_v26 }
 0x283   :  { %v379_v31 = vadd.s32 %v378_v30, %v374_v29 }
 0x285   :  { %v380_v32 = vadd.s32 536870912, %v379_v31 }
 0x287   :  { %v381_v33 = vshrl.u32 %v380_v32, 30 }
 0x289   :  { %v382_v34 = vshll.u32 %v381_v33, 30  ;;  %v405_v56 = vsub.s32 4, %v381_v33 }
 0x28b   :  { %v383_v35 = vsub.s32 %v379_v31, %v382_v34  ;;  %v406_v59 = vsel %vm321_vm11, %v405_v56, %v381_v33 }
 0x28c   :  { %v408_v60 = vsel %vm320_vm12, 0, %v406_v59 }
 0x28d   :  { %v385_v36 = vsub.s32 0, %v383_v35  ;;  %v412_v61 = vadd.s32 3, %v408_v60 }
 0x28f   :  { %v449_v37 = vmin.u32 %v385_v36, %v383_v35  ;;  %v413_v62 = vand.u32 3, %v412_v61 }
 0x291   :  { %v387_v38 = vclz %v449_v37  ;;  %vm418_vm13 = vcmp.eq.s32.totalorder %v413_v62, 2  ;;  %vm415_vm14 = vcmp.eq.s32.totalorder %v413_v62, 0  ;;  %vm414_vm15 = vcmp.lt.s32.totalorder %v413_v62, 2 }
 0x293   :  { %v450_v39 = vadd.s32 4294967294, %v387_v38 }
 0x295   :  { %vm451_vm10 = vcmp.lt.s32.totalorder %v450_v39, 0 }
 0x296   :  { %v390_v41 = vsel %vm451_vm10, 0, %v450_v39 }
 0x297   :  { %v391_v43 = vsub.s32 32, %v390_v41  ;;  %v395_v44 = vsub.s32 4294967266, %v390_v41  ;;  %v392_v45 = vshll.u32 %v383_v35, %v390_v41 }
 0x299   :  { %v393_v47 = vshrl.u32 %v375_v42, %v391_v43  ;;  %v396_v48 = vadd.s32 127, %v395_v44 }
 0x29b   :  { %v394_v49 = vor.u32 %v393_v47, %v392_v45  ;;  %v397_v50 = vshll.u32 %v396_v48, 23 }
 0x29d   :  { %v398_v51 = vor.u32 4788187, %v397_v50  ;;  %v401_v53 = vcvt.s32.f32 %v394_v49 }
 0x29f   :  { %v399_v52 = vand.u32 2147483647, %v398_v51 }
 0x2a1   :  { %v402_v54 = vmul.f32 %v401_v53, %v399_v52 }
 0x2a3   :  { %v403_v55 = vxor.u32 2147483648, %v402_v54 }
 0x2a5   :  { %v404_v57 = vsel %vm321_vm11, %v403_v55, %v402_v54 }
 0x2a6   :  { %v407_v58 = vsel %vm320_vm12, %v650_v40, %v404_v57 }
 0x2a7   :  { %518 = vcosq.f32 %v407_v58 }
 0x2a8   :  { %520 = vsinq.f32 %v407_v58 }
 0x2b4   :  { %v519_v63 = vpop.eup %518 }
 0x2b5   :  { %v521_v0 = vpop.eup %520  ;;  %v419_v1 = vxor.u32 2147483648, %v519_v63 }
 0x2b6   :  { %v416_v2 = vxor.u32 2147483648, %v521_v0 }
 0x2b7   :  { %v420_v3 = vsel %vm418_vm13, %v419_v1, %v521_v0 }
 0x2b8   :  { %v417_v4 = vsel %vm415_vm14, %v519_v63, %v416_v2 }
 0x2b9   :  { %v421_v46 = vsel %vm414_vm15, %v417_v4, %v420_v3 }
 0x2ba   :  { %v422_v5 = vsel %vm411_vm0, nan, %v421_v46 }
 0x2bb   :  { %v423_v6 = vmul.f32 0.903395, %v422_v5 }
 0x2bd   :  { %v452_v7 = vadd.f32 -0.965705, %v423_v6 }
 0x2bf   :  { %425 = vst [vmem:[#allocation2] sm:$0x1] %v452_v7 }
 0x2c0   :  { %533 = shalt.err (!%p530_p4)
}
 0x2c1   :  { %435 = dma.vmem_to_hbm [thread:$0]  %s433_s16, 16, %s680_s6, [#allocation3]  }
 0x2c2   :  { %542 = dma.done.wait [#allocation3], 16  }
 0x2c3   :  { %543 = vsyncadd [#allocation3], 4294967280 }
 0x2c4   :  { %439 = vsyncpa [#allocation3], 1 }

</bundles_post_ra>
